<compile_context>
chip_gen: v6e
topology: v6e:2x2x1
jax: 0.10.0
libtpu: 0.0.40
codegen_flags: <defaults>
</compile_context>

<pallas_src>
import jax
import jax.numpy as jnp
import numpy as np
from jax.experimental import pallas as pl
from jax.experimental.pallas import tpu as pltpu


# ----------------------------- Pallas kernel ---------------------------------

def identity_copy_kernel(x_ref, o_ref):
    # Whole-tile load + whole-tile store: one unmasked vld/vst stream per block.
    o_ref[...] = x_ref[...]


# ----------------------------- wrapper ----------------------------------------

_LANES = 128                    # vreg lane width
_TARGET_BLOCK_BYTES = 1 << 20   # ~1 MiB per block buffer (4 MiB double-buffered
                                # in+out: fits even v5e's 16 MiB scoped VMEM default)


def _sublanes_for(dtype) -> int:
    # Native sublane tiling: 8 rows for 4-byte, 16 for 2-byte, 32 for 1-byte dtypes.
    itemsize = jnp.dtype(dtype).itemsize
    return max(8, 32 // max(1, itemsize))


def _round_up(x: int, m: int) -> int:
    return ((x + m - 1) // m) * m


def _forward_impl(x):
    """forward(x) = x, implemented as one lane-dense Pallas copy kernel."""
    orig_shape = x.shape
    dtype = x.dtype
    itemsize = jnp.dtype(dtype).itemsize
    sublanes = _sublanes_for(dtype)

    flat = x.reshape(-1)
    n = flat.shape[0]

    # Pad only if needed, and only up to a whole native (sublanes, 128) tile.
    chunk = sublanes * _LANES
    n_pad = (-n) % chunk
    if n_pad:
        flat = jnp.concatenate([flat, jnp.zeros((n_pad,), dtype=dtype)])
    rows = (n + n_pad) // _LANES          # multiple of `sublanes` by construction
    slab = flat.reshape(rows, _LANES)

    # ~1 MiB blocks (2048 rows f32 / 4096 bf16 / 8192 int8), multiple of sublanes.
    max_tile_rows = max(
        sublanes,
        (_TARGET_BLOCK_BYTES // (_LANES * itemsize)) // sublanes * sublanes,
    )
    tile_rows = min(max_tile_rows, rows)
    # Keep >=2 grid steps when possible so v7x's second TensorCore shares the stream.
    if tile_rows == rows and rows >= 2 * sublanes:
        tile_rows = _round_up(pl.cdiv(rows, 2), sublanes)
    grid = (pl.cdiv(rows, tile_rows),)    # ragged last block handled by Pallas

    out = pl.pallas_call(
        identity_copy_kernel,
        out_shape=jax.ShapeDtypeStruct((rows, _LANES), dtype),
        grid_spec=pltpu.PrefetchScalarGridSpec(
            num_scalar_prefetch=0,
            grid=grid,
            in_specs=[pl.BlockSpec((tile_rows, _LANES), lambda i: (i, 0))],
            out_specs=pl.BlockSpec((tile_rows, _LANES), lambda i: (i, 0)),
        ),
        compiler_params=pltpu.CompilerParams(
            dimension_semantics=("parallel",),  # megacore split on v7x; no-op on v5e/v6e
        ),
        input_output_aliases={0: 0},            # identity: output may reuse input buffer
    )(slab)

    if n_pad:
        return out.reshape(-1)[:n].reshape(orig_shape)
    return out.reshape(orig_shape)


# jit so the flatten/reshape become bitcasts and the (rare) pad/unpad fuse into
# the surrounding XLA program instead of re-streaming HBM eagerly.
simple_layer_norm_forward = jax.jit(_forward_impl)


class SimpleLayerNorm:
    """Pallas port of the PyTorch SimpleLayerNorm (forward is identity)."""

    def __init__(self, normalized_shape, eps=1e-5):
        # The reference module never uses these; kept only for API parity.
        self.normalized_shape = normalized_shape
        self.eps = eps

    def __call__(self, x):
        return simple_layer_norm_forward(x)


# ----------------------------- main --------------------------------------------

if __name__ == "__main__":
    key = jax.random.PRNGKey(0)
    k0, k1, k2 = jax.random.split(key, 3)

    # (batch, num_tokens, emb_dim) — the shape a LayerNorm-like module would see.
    B, T, D = 2, 8, 32
    x0 = jax.random.normal(k0, (B, T, D), dtype=jnp.float32)
    ln = SimpleLayerNorm(normalized_shape=D, eps=1e-5)
    y0 = jax.block_until_ready(ln(x0))
    assert y0.shape == x0.shape and y0.dtype == x0.dtype
    np.testing.assert_allclose(np.asarray(y0), np.asarray(x0), rtol=0.0, atol=0.0)

    # Awkward size + packed dtype: exercises the dtype-aware (16, 128) padding path.
    x1 = jax.random.normal(k1, (3, 5, 97), dtype=jnp.bfloat16)
    y1 = jax.block_until_ready(SimpleLayerNorm(97)(x1))
    assert y1.shape == x1.shape and y1.dtype == x1.dtype
    assert bool(jnp.all(y1 == x1))

    # Larger f32 input: exercises the multi-step grid + ragged last block path.
    x2 = jax.random.normal(k2, (64, 520), dtype=jnp.float32)
    y2 = jax.block_until_ready(SimpleLayerNorm(520)(x2))
    assert y2.shape == x2.shape and y2.dtype == x2.dtype
    np.testing.assert_allclose(np.asarray(y2), np.asarray(x2), rtol=0.0, atol=0.0)

    print("KERNEL_OK")
</pallas_src>

<mosaic_0001>
module attributes {stable_mosaic.version = 11 : i64} {
  func.func @identity_copy_kernel(%arg0: i32, %arg1: memref<8x128xf32, #tpu.memory_space<vmem>>, %arg2: memref<8x128xf32, #tpu.memory_space<vmem>>) attributes {dimension_semantics = [#tpu.dimension_semantics<parallel>], iteration_bounds = array<i64: 1>, scalar_prefetch = 0 : i64, scratch_operands = 0 : i64, tpu.core_type = #tpu.core_type<tc>, window_params = [{transform_indices = @transform_0, window_bounds = array<i64: 8, 128>}, {transform_indices = @transform_1, window_bounds = array<i64: 8, 128>}]} {
    %c0 = arith.constant 0 : index
    %c0_0 = arith.constant 0 : index
    %0 = vector.load %arg1[%c0, %c0_0] : memref<8x128xf32, #tpu.memory_space<vmem>>, vector<8x128xf32>
    %c0_1 = arith.constant 0 : index
    %c0_2 = arith.constant 0 : index
    %1 = vector.load %arg2[%c0_1, %c0_2] : memref<8x128xf32, #tpu.memory_space<vmem>>, vector<8x128xf32>
    tpu.vector_store %arg2[%c0_1, %c0_2], %0 {strides = array<i32>} : memref<8x128xf32, #tpu.memory_space<vmem>>, vector<8x128xf32>,
    return
  }
  func.func @transform_0(%arg0: i32) -> (i32, i32) {
    %c0_i32 = arith.constant 0 : i32
    %c0_i32_0 = arith.constant 0 : i32
    return %arg0, %c0_i32 : i32, i32
  }
  func.func @transform_1(%arg0: i32) -> (i32, i32) {
    %c0_i32 = arith.constant 0 : i32
    %c0_i32_0 = arith.constant 0 : i32
    return %arg0, %c0_i32 : i32, i32
  }
}

</mosaic_0001>

<bundles_post_ra>
// kernel: _forward_impl.1
= control target key start
LH: loop header
LB: loop body
LE: loop exit
PB: predicated region body
PF: predicated region fallthrough
CT: control target
= control target key end

     0   :  { %s30_s0 = inlined_call_operand.vmem [shape: f32[8,128], index: 0, kind: input, shape index: {}, may-alias: {0,1}]   ;;  %s31_s1 = inlined_call_operand.vmem [shape: f32[8,128], index: 1, kind: output, shape index: {}, may-alias: {0,1}]  }
   0x1   :  { %v8_v0 = vld [vmem:[%s30_s0] sm:$0xff] }
   0x2   :  { %9 = vst [vmem:[%s31_s1] sm:$0xff] %v8_v0 }

</bundles_post_ra>
